<compile_context>
chip_gen: v7x
topology: tpu7x:2x2x1
jax: 0.10.0
libtpu: 0.0.40
codegen_flags: <defaults>
</compile_context>

<pallas_src>
import functools

import jax
import jax.numpy as jnp
from jax.experimental import pallas as pl
from jax.experimental.pallas import tpu as pltpu


def _round_up(x, m):
  return ((x + m - 1) // m) * m


def _vmem_limit_bytes():
  # Derive the scoped-VMEM budget from the chip (v7x: 64 MiB total, v5e/v6e:
  # 128 MiB) instead of hard-coding; fall back if introspection is unavailable.
  try:
    cap = int(pltpu.get_tpu_info().vmem_capacity_bytes)
  except Exception:
    cap = 64 * 1024 * 1024
  return min(cap // 2, 64 * 1024 * 1024)


# ============================================================================
# Kernel 1: fused CLIP-vision stub + GILL visual head (+ visual_embs_norm)
# ============================================================================
def _vision_fused_kernel(patch_ref, avg_ref, pw_ref, pb_ref, poolw_ref,
                         poolb_ref, hw_ref, hb_ref, ve_ref, norm_ref, *, batch):
  # Patch "conv" as a matmul on the MXU: (B*P, 3*p*p) @ (3*p*p, H).
  pe = jnp.dot(patch_ref[...], pw_ref[...],
               preferred_element_type=jnp.float32) + pb_ref[...]      # (B*P, H)
  # Mean-pool per image with one tiny bf16 MXU matmul; the (B, B*P) averaging
  # matrix is a wrapper-built bf16 constant (no in-kernel iota/where filler).
  pooled = jnp.dot(avg_ref[...], pe.astype(jnp.bfloat16),
                   preferred_element_type=jnp.float32)                # (B, H)
  # CLIP pooler head: tanh(pooled @ Wp + bp)  (epilogue math stays f32: v5e).
  pooler = jnp.tanh(
      jnp.dot(pooled.astype(jnp.bfloat16), poolw_ref[...],
              preferred_element_type=jnp.float32) + poolb_ref[...])   # (B, H)
  # GILL head (visual_embeddings for captioning / visual_fc for retrieval).
  ve = jnp.dot(pooler.astype(jnp.bfloat16), hw_ref[...],
               preferred_element_type=jnp.float32) + hb_ref[...]      # (B, E)
  ve_ref[...] = ve
  # Epilogue-fused visual_embs_norm = mean_i ||ve_i||_2  (n_visual_tokens == 1).
  rn = jnp.sqrt(jnp.sum(ve * ve, axis=-1, keepdims=True))             # (B, 1)
  norm_ref[...] = jnp.sum(rn, axis=0, keepdims=True) / float(batch)   # (1, 1)


def fused_vision(patches_bf16, avg_bf16, patch_w, patch_b, pool_w, pool_b,
                 head_w, head_b, *, batch):
  """Patch-embed -> mean-pool -> tanh pooler -> GILL head, plus the row-norm."""
  emb_dim = head_w.shape[1]
  hid = patch_w.shape[1]
  bp, patch_dim = patches_bf16.shape
  vmem = pl.BlockSpec(memory_space=pltpu.MemorySpace.VMEM)
  flops = (2 * bp * patch_dim * hid + 2 * batch * bp * hid
           + 2 * batch * hid * hid + 2 * batch * hid * emb_dim)
  bytes_accessed = (patches_bf16.size * 2 + avg_bf16.size * 2 + patch_w.size * 2
                    + pool_w.size * 2 + head_w.size * 2 + patch_b.size * 4
                    + pool_b.size * 4 + head_b.size * 4 + batch * emb_dim * 4
                    + 4)
  ve, norm = pl.pallas_call(
      functools.partial(_vision_fused_kernel, batch=batch),
      out_shape=(jax.ShapeDtypeStruct((batch, emb_dim), jnp.float32),
                 jax.ShapeDtypeStruct((1, 1), jnp.float32)),
      in_specs=[vmem] * 8,
      out_specs=(vmem, vmem),
      compiler_params=pltpu.CompilerParams(
          vmem_limit_bytes=_vmem_limit_bytes()),
      cost_estimate=pl.CostEstimate(flops=flops, transcendentals=batch * hid,
                                    bytes_accessed=bytes_accessed),
  )(patches_bf16, avg_bf16, patch_w, patch_b, pool_w, pool_b, head_w, head_b)
  # TODO(synk): at real CLIP-L scale (257 patches, 24 layers) this becomes a
  # gridded per-layer pipeline; at stub scale one fused call is launch-optimal.
  return ve, norm[0, 0]


# ============================================================================
# Kernel 2: fused OPT-LM stub: embedding gather + MLP + residual + tied head
#           + masked CE.  Vocab axis is the grid reduction (online logsumexp).
# ============================================================================
def _lm_fused_kernel(lab_ref,                                  # scalar prefetch
                     ve_ref, w1_ref, b1_ref, w2_ref, b2_ref,
                     emb_ref, emb_hbm_ref, tlab_ref, tmask_ref,
                     logits_ref, hidden_ref, xout_ref, loss_ref, tnorm_ref,
                     xbuf, hbf, m_sc, l_sc, tgt_sc, gsem,
                     *, tile_v, batch, vis_len, text_len, n_text_rows):
  j = pl.program_id(0)
  seq = vis_len + text_len
  n_real = batch * seq
  m_pad, d = xbuf.shape

  @pl.when(j == 0)
  def _prologue():
    # ---- assemble the input-embedding matrix directly in VMEM ---------------
    # visual-token rows come from the vision kernel's output (bf16, VMEM).
    for bb in range(batch):
      for vv in range(vis_len):
        r = bb * seq + vv
        xbuf[pl.ds(r, 1), :] = ve_ref[pl.ds(bb * vis_len + vv, 1), :]
    # text-token rows: DMA gather of embedding-table rows from HBM; indices
    # are read from the scalar-prefetch SMEM buffer.  All copies are started
    # before any wait so their latencies overlap.
    copies = []
    for bb in range(batch):
      for tt in range(text_len):
        r = bb * text_len + tt
        tok = lab_ref[r]
        cp = pltpu.make_async_copy(
            emb_hbm_ref.at[pl.ds(tok, 1)],
            xbuf.at[pl.ds(bb * seq + vis_len + tt, 1)],
            gsem.at[r])
        copies.append(cp)
        cp.start()
    # Rows padded up to the sublane/MXU-friendly M are zero (masked in the CE).
    if m_pad > n_real:
      xbuf[pl.ds(n_real, m_pad - n_real), :] = jnp.zeros(
          (m_pad - n_real, d), xbuf.dtype)
    for cp in copies:
      cp.wait()

    xb = xbuf[...]
    xout_ref[...] = xb                           # "embedding layer" hidden state
    x32 = xb.astype(jnp.float32)
    # ---- MLP block: bf16 MXU operands, f32 accumulation, f32 epilogue -------
    h1 = jnp.dot(xb, w1_ref[...],
                 preferred_element_type=jnp.float32) + b1_ref[...]
    h1 = jax.nn.gelu(h1, approximate=True)
    h2 = jnp.dot(h1.astype(jnp.bfloat16), w2_ref[...],
                 preferred_element_type=jnp.float32) + b2_ref[...]
    hout = x32 + h2                                                   # residual
    hidden_ref[...] = hout
    hbf[...] = hout.astype(jnp.bfloat16)   # cast ONCE; reused by every vocab tile
    # Online-LSE / target-logit state.
    m_sc[...] = jnp.full_like(m_sc, -jnp.inf)
    l_sc[...] = jnp.zeros_like(l_sc)
    tgt_sc[...] = jnp.zeros_like(tgt_sc)
    # Epilogue-fused input_embs_norm over the text-token rows only (reference
    # computes the norm on input_embs BEFORE the visual concat).
    rn = jnp.sqrt(jnp.sum(x32 * x32, axis=-1, keepdims=True))         # (M, 1)
    tnorm_ref[...] = (jnp.sum(rn * tmask_ref[...], axis=0, keepdims=True)
                      / float(n_text_rows))

  # ---- tied-embedding head for this vocab tile: logits = hout @ emb_tile^T ---
  # (table consumed untransposed; the transpose lives in the contraction dims)
  lt = jax.lax.dot_general(
      hbf[...], emb_ref[...],
      dimension_numbers=(((1,), (1,)), ((), ())),
      preferred_element_type=jnp.float32)                             # (M, TV)
  logits_ref[...] = lt.astype(logits_ref.dtype)                       # bf16 write

  # Streaming masked cross-entropy: no (M, V) one-hot, logits never re-read.
  tlab = tlab_ref[...]                                                # (M,1) i32
  col = jax.lax.broadcasted_iota(jnp.int32, lt.shape, 1) + j * tile_v
  tgt_sc[...] += jnp.sum(jnp.where(col == tlab, lt, 0.0),
                         axis=-1, keepdims=True)
  m_new = jnp.maximum(m_sc[...], jnp.max(lt, axis=-1, keepdims=True))
  l_sc[...] = (l_sc[...] * jnp.exp(m_sc[...] - m_new)
               + jnp.sum(jnp.exp(lt - m_new), axis=-1, keepdims=True))
  m_sc[...] = m_new

  @pl.when(j == pl.num_programs(0) - 1)
  def _epilogue():
    lse = m_sc[...] + jnp.log(l_sc[...])                              # (M, 1)
    msk = (tlab_ref[...] != -100).astype(jnp.float32)                 # (M, 1)
    nll = (lse - tgt_sc[...]) * msk
    den = jnp.maximum(jnp.sum(msk, axis=0, keepdims=True), 1.0)       # (1, 1)
    loss_ref[...] = jnp.sum(nll, axis=0, keepdims=True) / den


def fused_lm(token_ids, visual_embs, w1, b1, w2, b2, emb_table, tlab, tmask,
             *, batch, vis_len, text_len, m_pad, n_text_rows, tile_v=None):
  """One pallas_call for the whole LM stub.  Grid = vocab tiles (reduction)."""
  v, d = emb_table.shape
  four_d = w1.shape[1]
  if tile_v is None:
    # Stub scale: a single full-width vocab pass (grid of 1) avoids paying the
    # ~0.35us/step grid overhead for a ~5 MFLOP head.  At real OPT scale pick
    # tile_v from the VMEM budget (v7x 64 MiB -> ~1-2K, v5e/v6e -> 2-4K) and
    # keep the vocab axis as the trailing "arbitrary" reduction.
    tile_v = v
  assert v % tile_v == 0
  n_vtiles = v // tile_v
  m = m_pad

  flops = 2 * m * d * four_d + 2 * m * four_d * d + 2 * m * d * v
  transcendentals = m * four_d + m * v
  bytes_accessed = (token_ids.size * 4 + visual_embs.size * 2
                    + w1.size * 2 + w2.size * 2 + emb_table.size * 2
                    + b1.size * 4 + b2.size * 4 + tlab.size * 4 + tmask.size * 4
                    + m * v * 2 + m * d * 4 + m * d * 2 + 8)

  grid_spec = pltpu.PrefetchScalarGridSpec(
      num_scalar_prefetch=1,                             # token ids -> SMEM
      grid=(n_vtiles,),
      in_specs=[
          pl.BlockSpec((batch * vis_len, d), lambda j, lab: (0, 0)),  # vis rows
          pl.BlockSpec((d, four_d), lambda j, lab: (0, 0)),           # lm_w1
          pl.BlockSpec((1, four_d), lambda j, lab: (0, 0)),           # lm_b1
          pl.BlockSpec((four_d, d), lambda j, lab: (0, 0)),           # lm_w2
          pl.BlockSpec((1, d), lambda j, lab: (0, 0)),                # lm_b2
          pl.BlockSpec((tile_v, d), lambda j, lab: (j, 0)),           # emb tile
          pl.BlockSpec(memory_space=pl.ANY),               # emb table (HBM, gather)
          pl.BlockSpec((m, 1), lambda j, lab: (0, 0)),                # targets
          pl.BlockSpec((m, 1), lambda j, lab: (0, 0)),                # text mask
      ],
      out_specs=[
          pl.BlockSpec((m, tile_v), lambda j, lab: (0, j)),           # logits
          pl.BlockSpec((m, d), lambda j, lab: (0, 0)),                # hidden
          pl.BlockSpec((m, d), lambda j, lab: (0, 0)),                # input embs
          pl.BlockSpec((1, 1), lambda j, lab: (0, 0)),                # loss
          pl.BlockSpec((1, 1), lambda j, lab: (0, 0)),                # embs norm
      ],
      scratch_shapes=[
          pltpu.VMEM((m, d), jnp.bfloat16),                # assembled x (gather dst)
          pltpu.VMEM((m, d), jnp.bfloat16),                # hout cast to bf16 once
          pltpu.VMEM((m, 1), jnp.float32),                 # running max
          pltpu.VMEM((m, 1), jnp.float32),                 # running sum-exp
          pltpu.VMEM((m, 1), jnp.float32),                 # target logit
          pltpu.SemaphoreType.DMA((batch * text_len,)),    # gather DMA sems
      ])

  # NOTE: at real OPT scale add a "parallel" M axis (v7x has 2 TensorCores) in
  # front of the vocab reduction, and tile the prologue MLP over M so its f32
  # (M,4D) intermediate does not compete with the vocab double buffers for
  # v7x's 64 MiB VMEM.  At this stub scale one reduction axis is enough.
  logits, hidden, xout, loss, tnorm = pl.pallas_call(
      functools.partial(_lm_fused_kernel, tile_v=tile_v, batch=batch,
                        vis_len=vis_len, text_len=text_len,
                        n_text_rows=n_text_rows),
      out_shape=(
          jax.ShapeDtypeStruct((m, v), jnp.bfloat16),      # bf16 logits writeback
          jax.ShapeDtypeStruct((m, d), jnp.float32),
          jax.ShapeDtypeStruct((m, d), jnp.bfloat16),
          jax.ShapeDtypeStruct((1, 1), jnp.float32),
          jax.ShapeDtypeStruct((1, 1), jnp.float32),
      ),
      grid_spec=grid_spec,
      compiler_params=pltpu.CompilerParams(
          dimension_semantics=("arbitrary",),              # vocab = reduction
          vmem_limit_bytes=_vmem_limit_bytes()),
      cost_estimate=pl.CostEstimate(flops=flops,
                                    transcendentals=transcendentals,
                                    bytes_accessed=bytes_accessed),
  )(token_ids, visual_embs, w1, b1, w2, b2, emb_table, emb_table, tlab, tmask)
  return logits, hidden, xout, loss[0, 0], tnorm[0, 0]


# ============================================================================
# GILLModel (synthetic, small) — mode='captioning' forward pass
# ============================================================================
class GILLModelPallas:
  # Lane-dense stand-in config (shapes scaled down from GILLArgs / OPT / CLIP-L).
  VOCAB = 512            # multiple of 128 (tied head tiles are lane-dense)
  LM_DIM = 128           # word_embed_proj_dim of the (stub) OPT LM
  VIS_HIDDEN = 128       # CLIP vision hidden_size (stub)
  N_VISUAL_TOKENS = 1
  RET_EMB_DIM = 256
  NUM_TOKENS = 8
  PATCH = 8
  PAD_TOKEN_ID = 1
  RETRIEVAL_TOKEN_IDX = [0]
  GEN_TOKEN_IDX = [0]

  def __init__(self, key):
    ks = jax.random.split(key, 8)
    s = 0.02
    D, V, Hh = self.LM_DIM, self.VOCAB, self.VIS_HIDDEN
    patch_dim = 3 * self.PATCH * self.PATCH
    emb_dim = D * self.N_VISUAL_TOKENS

    def w(k, shape):  # weights stored bf16 (MXU operands / half the HBM bytes)
      return (s * jax.random.normal(k, shape, jnp.float32)).astype(jnp.bfloat16)

    # LM input embedding table (lm.get_input_embeddings()), tied output head.
    self.emb_table = w(ks[0], (V, D))
    # CLIP-vision stub: patch embedding (conv as matmul) + pooler head.
    self.patch_w = w(ks[1], (patch_dim, Hh))
    self.patch_b = jnp.zeros((1, Hh), jnp.float32)
    self.pool_w = w(ks[2], (Hh, Hh))
    self.pool_b = jnp.zeros((1, Hh), jnp.float32)
    # GILLModel's own heads.
    self.visual_embeddings_w = w(ks[3], (Hh, emb_dim))
    self.visual_embeddings_b = jnp.zeros((1, emb_dim), jnp.float32)
    self.visual_fc_w = w(ks[4], (Hh, self.RET_EMB_DIM))
    self.visual_fc_b = jnp.zeros((1, self.RET_EMB_DIM), jnp.float32)
    self.logit_scale = jnp.log(1.0 / 0.07)
    # OPT LM stub: one residual MLP block + tied-embedding output head.
    self.lm_w1 = w(ks[5], (D, 4 * D))
    self.lm_b1 = jnp.zeros((1, 4 * D), jnp.float32)
    self.lm_w2 = w(ks[6], (4 * D, D))
    self.lm_b2 = jnp.zeros((1, D), jnp.float32)
    # TODO(synk): ret_text_hidden_fcs / gen_text_hidden_fcs (TextFcLayer
    # 'gill_mapper') are only exercised in retrieval/generation modes;
    # v7x-only fp8 storage of emb_table is likewise out of scope for the stub.

  # ---- CLIP-vision stub + GILL head, fully fused -----------------------------
  def _patchify(self, pixel_values):
    b, c, h, w = pixel_values.shape
    p = self.PATCH
    x = pixel_values.reshape(b, c, h // p, p, w // p, p)
    x = jnp.transpose(x, (0, 2, 4, 1, 3, 5)).reshape(
        b * (h // p) * (w // p), c * p * p)
    return x.astype(jnp.bfloat16), (h // p) * (w // p)

  def get_visual_embs(self, pixel_values, mode="captioning"):
    if mode not in ["captioning", "retrieval", "generation"]:
      raise ValueError(mode)
    if mode == "generation":
      return (jnp.zeros((pixel_values.shape[0], 1, 768), jnp.float32),
              jnp.float32(0.0))
    patches, n_patches = self._patchify(pixel_values)
    batch = pixel_values.shape[0]
    # Mean-pool matrix built once in the wrapper as a bf16 constant.
    owner = jnp.arange(batch * n_patches, dtype=jnp.int32) // n_patches
    avg = (owner[None, :] == jnp.arange(batch, dtype=jnp.int32)[:, None])
    avg = (avg.astype(jnp.float32) / float(n_patches)).astype(jnp.bfloat16)
    if mode == "captioning":
      hw, hb = self.visual_embeddings_w, self.visual_embeddings_b
    else:  # retrieval
      hw, hb = self.visual_fc_w, self.visual_fc_b
    ve, ve_norm = fused_vision(patches, avg, self.patch_w, self.patch_b,
                               self.pool_w, self.pool_b, hw, hb, batch=batch)
    n_tok = self.N_VISUAL_TOKENS if mode == "captioning" else 1
    return ve.reshape(ve.shape[0], n_tok, -1), ve_norm

  # ---- forward (mode='captioning', captions=None, input_prefix=None) ---------
  def forward(self, pixel_values, labels, caption_len, mode="captioning"):
    if mode != "captioning":
      # TODO(synk): retrieval/generation branches (TextFcLayer heads, logit
      # scaling, per-example hidden-state gathers) not implemented.
      raise NotImplementedError
    batch_size = pixel_values.shape[0]
    if pixel_values.ndim > 4:
      pixel_values = pixel_values.reshape(-1, *pixel_values.shape[2:])

    # visual_embs_norm is produced in the vision kernel's epilogue.
    visual_embs, visual_embs_norm = self.get_visual_embs(pixel_values, mode)
    _, vis_seq_len, vis_dim = visual_embs.shape
    assert labels.shape[0] == batch_size

    text_len = labels.shape[1]
    seq_len = vis_seq_len + text_len
    last_embedding_idx = caption_len - 1 + vis_seq_len  # unused in captioning

    full_labels = jnp.concatenate(
        [jnp.full((batch_size, vis_seq_len), -100, jnp.int32),
         labels.astype(jnp.int32)], axis=1)

    # pad_idx loop: zero out labels from the first pad/ret/gen token onward.
    special_ids = jnp.array(sorted({self.PAD_TOKEN_ID,
                                    *self.RETRIEVAL_TOKEN_IDX,
                                    *self.GEN_TOKEN_IDX}), jnp.int32)
    is_special = (full_labels[..., None] == special_ids[None, None, :]).any(-1)
    has_special = jnp.any(is_special, axis=1)
    first_special = jnp.argmax(is_special, axis=1)
    pos = jnp.arange(seq_len)[None, :]
    full_labels = jnp.where(
        has_special[:, None] & (pos >= first_special[:, None]), -100, full_labels)
    pad_idx = jnp.where(has_special, first_special, seq_len)

    # ---- fused OPT-stub LM: gather + MLP + residual + tied head + masked CE --
    b, s = batch_size, seq_len
    n_real = b * s
    m_pad = max(32, _round_up(n_real, 32))     # bf16 sublane / MXU-friendly M

    # Shifted causal-LM targets: row (b, t) predicts full_labels[b, t+1];
    # the last position of each sequence (and all padded rows) is ignored.
    tlab = jnp.concatenate(
        [full_labels[:, 1:], jnp.full((b, 1), -100, jnp.int32)],
        axis=1).reshape(n_real, 1)
    tlab = jnp.concatenate(
        [tlab, jnp.full((m_pad - n_real, 1), -100, jnp.int32)], axis=0)
    # Text-token rows (for the fused input_embs_norm); padded rows masked out.
    tmask = jnp.tile((jnp.arange(s)[None, :] >= vis_seq_len), (b, 1)
                     ).reshape(n_real, 1).astype(jnp.float32)
    tmask = jnp.concatenate(
        [tmask, jnp.zeros((m_pad - n_real, 1), jnp.float32)], axis=0)

    ve2d = visual_embs.reshape(b * vis_seq_len, vis_dim).astype(jnp.bfloat16)
    token_ids = labels.reshape(-1).astype(jnp.int32)      # gather indices (SMEM)

    logits_pad, hidden_pad, xemb_pad, loss, input_embs_norm = fused_lm(
        token_ids, ve2d, self.lm_w1, self.lm_b1, self.lm_w2, self.lm_b2,
        self.emb_table, tlab, tmask,
        batch=b, vis_len=vis_seq_len, text_len=text_len, m_pad=m_pad,
        n_text_rows=b * text_len)

    logits = logits_pad[:n_real].reshape(b, s, self.VOCAB)   # bf16 storage
    hidden = hidden_pad[:n_real].reshape(b, s, self.LM_DIM)
    input_embs = xemb_pad[:n_real].reshape(b, s, self.LM_DIM)

    output = {
        "loss": loss,
        "logits": logits,
        "hidden_states": (input_embs, hidden),
    }

    last_embedding = None
    last_output_logit = None
    llm_hidden_states = []
    return (output, full_labels, last_embedding, last_output_logit,
            visual_embs, visual_embs_norm, input_embs_norm,
            llm_hidden_states, labels, pad_idx)

  # TODO(synk): prompt_wrap() and generate() are tokenizer-driven host-side
  # python loops (string splitting, argmax sampling loop); no clean single
  # Pallas kernel equivalent.


# ----------------------------------------------------------------------------
if __name__ == "__main__":
  key = jax.random.PRNGKey(0)
  k_model, k_pix, k_lab = jax.random.split(key, 3)

  B, C, H, W = 2, 3, 16, 16
  T = 8

  model = GILLModelPallas(k_model)

  pixel_values = jax.random.normal(k_pix, (B, C, H, W), jnp.float32)
  labels = jax.random.randint(k_lab, (B, T), 2, GILLModelPallas.VOCAB,
                              dtype=jnp.int32)
  # make row 0 end in pad tokens to exercise the pad_idx / -100 masking path
  labels = labels.at[0, 6:].set(GILLModelPallas.PAD_TOKEN_ID)
  caption_len = jnp.array([6, 8], jnp.int32)

  (output, full_labels, last_embedding, last_output_logit, visual_embs,
   visual_embs_norm, input_embs_norm, llm_hidden_states, labels_out,
   pad_idx) = model.forward(pixel_values, labels, caption_len,
                            mode="captioning")

  jax.block_until_ready(output["loss"])
  jax.block_until_ready(output["logits"])
  jax.block_until_ready(visual_embs)
  jax.block_until_ready(visual_embs_norm)
  jax.block_until_ready(input_embs_norm)
  jax.block_until_ready(full_labels)
  jax.block_until_ready(pad_idx)

  assert output["logits"].shape == (B, 1 + T, GILLModelPallas.VOCAB)
  assert output["hidden_states"][0].shape == (B, 1 + T, GILLModelPallas.LM_DIM)
  assert visual_embs.shape == (B, 1, GILLModelPallas.LM_DIM)
  assert full_labels.shape == (B, 1 + T)
  assert bool(jnp.isfinite(output["loss"]))
  assert bool(jnp.isfinite(visual_embs_norm))
  assert bool(jnp.isfinite(input_embs_norm))
  print("KERNEL_OK")
</pallas_src>

<mosaic_0001>
module attributes {stable_mosaic.version = 11 : i64} {
  func.func @_vision_fused_kernel(%arg0: memref<8x192xbf16, #tpu.memory_space<vmem>>, %arg1: memref<2x8xbf16, #tpu.memory_space<vmem>>, %arg2: memref<192x128xbf16, #tpu.memory_space<vmem>>, %arg3: memref<1x128xf32, #tpu.memory_space<vmem>>, %arg4: memref<128x128xbf16, #tpu.memory_space<vmem>>, %arg5: memref<1x128xf32, #tpu.memory_space<vmem>>, %arg6: memref<128x128xbf16, #tpu.memory_space<vmem>>, %arg7: memref<1x128xf32, #tpu.memory_space<vmem>>, %arg8: memref<2x128xf32, #tpu.memory_space<vmem>>, %arg9: memref<1x1xf32, #tpu.memory_space<vmem>>) attributes {dimension_semantics = [], scalar_prefetch = 0 : i64, scratch_operands = 0 : i64, tpu.core_type = #tpu.core_type<tc>} {
    %c0 = arith.constant 0 : index
    %c0_0 = arith.constant 0 : index
    %0 = vector.load %arg0[%c0, %c0_0] : memref<8x192xbf16, #tpu.memory_space<vmem>>, vector<8x192xbf16>
    %c0_1 = arith.constant 0 : index
    %c0_2 = arith.constant 0 : index
    %1 = vector.load %arg2[%c0_1, %c0_2] : memref<192x128xbf16, #tpu.memory_space<vmem>>, vector<192x128xbf16>
    %cst = arith.constant dense<0.000000e+00> : vector<8x128xf32>
    %2 = tpu.matmul %0, %1, %cst {dimension_numbers = #tpu.dot_dimension_numbers<[1], [0], [0], [1], [0, 0, 1, 1], [], []>} : vector<8x192xbf16>, vector<192x128xbf16>, vector<8x128xf32> -> vector<8x128xf32>
    %c0_3 = arith.constant 0 : index
    %c0_4 = arith.constant 0 : index
    %3 = vector.load %arg3[%c0_3, %c0_4] : memref<1x128xf32, #tpu.memory_space<vmem>>, vector<1x128xf32>
    %4 = vector.broadcast %3 : vector<1x128xf32> to vector<8x128xf32>
    %5 = arith.addf %2, %4 : vector<8x128xf32>
    %c0_5 = arith.constant 0 : index
    %c0_6 = arith.constant 0 : index
    %6 = vector.load %arg1[%c0_5, %c0_6] : memref<2x8xbf16, #tpu.memory_space<vmem>>, vector<2x8xbf16>
    %7 = arith.truncf %5 : vector<8x128xf32> to vector<8x128xbf16>
    %cst_7 = arith.constant dense<0.000000e+00> : vector<2x128xf32>
    %8 = tpu.matmul %6, %7, %cst_7 {dimension_numbers = #tpu.dot_dimension_numbers<[1], [0], [0], [1], [0, 0, 1, 1], [], []>} : vector<2x8xbf16>, vector<8x128xbf16>, vector<2x128xf32> -> vector<2x128xf32>
    %9 = arith.truncf %8 : vector<2x128xf32> to vector<2x128xbf16>
    %c0_8 = arith.constant 0 : index
    %c0_9 = arith.constant 0 : index
    %10 = vector.load %arg4[%c0_8, %c0_9] : memref<128x128xbf16, #tpu.memory_space<vmem>>, vector<128x128xbf16>
    %cst_10 = arith.constant dense<0.000000e+00> : vector<2x128xf32>
    %11 = tpu.matmul %9, %10, %cst_10 {dimension_numbers = #tpu.dot_dimension_numbers<[1], [0], [0], [1], [0, 0, 1, 1], [], []>} : vector<2x128xbf16>, vector<128x128xbf16>, vector<2x128xf32> -> vector<2x128xf32>
    %c0_11 = arith.constant 0 : index
    %c0_12 = arith.constant 0 : index
    %12 = vector.load %arg5[%c0_11, %c0_12] : memref<1x128xf32, #tpu.memory_space<vmem>>, vector<1x128xf32>
    %13 = vector.broadcast %12 : vector<1x128xf32> to vector<2x128xf32>
    %14 = arith.addf %11, %13 : vector<2x128xf32>
    %15 = math.tanh %14 : vector<2x128xf32>
    %16 = arith.truncf %15 : vector<2x128xf32> to vector<2x128xbf16>
    %c0_13 = arith.constant 0 : index
    %c0_14 = arith.constant 0 : index
    %17 = vector.load %arg6[%c0_13, %c0_14] : memref<128x128xbf16, #tpu.memory_space<vmem>>, vector<128x128xbf16>
    %cst_15 = arith.constant dense<0.000000e+00> : vector<2x128xf32>
    %18 = tpu.matmul %16, %17, %cst_15 {dimension_numbers = #tpu.dot_dimension_numbers<[1], [0], [0], [1], [0, 0, 1, 1], [], []>} : vector<2x128xbf16>, vector<128x128xbf16>, vector<2x128xf32> -> vector<2x128xf32>
    %c0_16 = arith.constant 0 : index
    %c0_17 = arith.constant 0 : index
    %19 = vector.load %arg7[%c0_16, %c0_17] : memref<1x128xf32, #tpu.memory_space<vmem>>, vector<1x128xf32>
    %20 = vector.broadcast %19 : vector<1x128xf32> to vector<2x128xf32>
    %21 = arith.addf %18, %20 : vector<2x128xf32>
    %c0_18 = arith.constant 0 : index
    %c0_19 = arith.constant 0 : index
    %22 = vector.load %arg8[%c0_18, %c0_19] : memref<2x128xf32, #tpu.memory_space<vmem>>, vector<2x128xf32>
    tpu.vector_store %arg8[%c0_18, %c0_19], %21 {strides = array<i32>} : memref<2x128xf32, #tpu.memory_space<vmem>>, vector<2x128xf32>,
    %23 = arith.mulf %21, %21 : vector<2x128xf32>
    %cst_20 = arith.constant dense<0.000000e+00> : vector<2xf32>
    %24 = vector.multi_reduction <add>, %23, %cst_20 [1] : vector<2x128xf32> to vector<2xf32>
    %25 = vector.shape_cast %24 : vector<2xf32> to vector<2x1xf32>
    %26 = math.sqrt %25 : vector<2x1xf32>
    %cst_21 = arith.constant dense<0.000000e+00> : vector<1xf32>
    %27 = vector.multi_reduction <add>, %26, %cst_21 [0] : vector<2x1xf32> to vector<1xf32>
    %28 = vector.shape_cast %27 : vector<1xf32> to vector<1x1xf32>
    %cst_22 = arith.constant 2.000000e+00 : f32
    %29 = vector.broadcast %cst_22 : f32 to vector<1x1xf32>
    %30 = arith.divf %28, %29 : vector<1x1xf32>
    %c0_23 = arith.constant 0 : index
    %c0_24 = arith.constant 0 : index
    %31 = vector.load %arg9[%c0_23, %c0_24] : memref<1x1xf32, #tpu.memory_space<vmem>>, vector<1x1xf32>
    tpu.vector_store %arg9[%c0_23, %c0_24], %30 {strides = array<i32>} : memref<1x1xf32, #tpu.memory_space<vmem>>, vector<1x1xf32>,
    return
  }
}

</mosaic_0001>

<bundles_post_ra>
// kernel: tpu_custom_call.1
= control target key start
LH: loop header
LB: loop body
LE: loop exit
PB: predicated region body
PF: predicated region fallthrough
CT: control target
= control target key end

     0   :  { %15 = vsyncpa [#allocation3], 0  ;;  %s1038_s0 = inlined_call_operand.hbm [shape: bf16[8,192], index: 0, kind: input, shape index: {}]   ;;  %s1039_s1 = inlined_call_operand.vmem [shape: bf16[2,8], index: 1, kind: input, shape index: {}]   ;;  %s1040_s2 = inlined_call_operand.hbm [shape: bf16[192,128], index: 2, kind: input, shape index: {}]   ;;  %s1041_s3 = inlined_call_operand.vmem [shape: f32[1,128], index: 3, kind: input, shape index: {}]   ;;  %s1042_s4 = inlined_call_operand.hbm [shape: bf16[128,128], index: 4, kind: input, shape index: {}]   ;;  %s1043_s5 = inlined_call_operand.vmem [shape: f32[1,128], index: 5, kind: input, shape index: {}]   ;;  %s1044_s6 = inlined_call_operand.hbm [shape: bf16[128,128], index: 6, kind: input, shape index: {}]   ;;  %s1045_s7 = inlined_call_operand.vmem [shape: f32[1,128], index: 7, kind: input, shape index: {}]   ;;  %s1046_s8 = inlined_call_operand.hbm [shape: f32[2,128], index: 8, kind: output, shape index: {0}]   ;;  %s1047_s9 = inlined_call_operand.hbm [shape: f32[1,1], index: 9, kind: output, shape index: {1}]  }
   0x1   :  { %16 = vsyncpa [#allocation6], 0 }
   0x2   :  { %17 = vsyncpa [#allocation9], 0 }
   0x3   :  { %18 = vsyncpa [#allocation4], 0 }
   0x4   :  { %19 = vsyncpa [#allocation12], 0  ;;  %s859_s30 = smov [#allocation5]   ;;  %s717_s13 = scalar_lea.hbm %s1040_s2, 1536 }
   0x5   :  { %s37_s10 = sshll.u32 %s859_s30, 4  ;;  %p718_p0 = scmp.ne.s32.totalorder %s1040_s2, %s717_s13  ;;  %s38_s10 = int_to_ptr.vmem [resolvable:$true] %s37_s10 }
   0x6   :  { %p721_p1 = scmp.lt.u32.totalorder %s717_s13, %s1040_s2 }
   0x8   :  { %p723_p2 = pnand %p721_p1, %p718_p0 }
   0xa   :  { %726 = shalt.err (!%p723_p2)
}
   0xb   :  { %s727_s18 = scalar_lea.vmem %s38_s10, 1536  ;;  %p732_p4 = scmp.lt.s32.totalorder %s38_s10, %s38_s10 }
   0xc   :  { %p728_p3 = scmp.ne.s32.totalorder %s38_s10, %s727_s18  ;;  %p733_p5 = scmp.lt.s32.totalorder %s727_s18, %s727_s18 }
   0xe   :  { %p734_p6 = por %p733_p5, %p732_p4 }
  0x10   :  { %p735_p7 = pnand %p734_p6, %p728_p3 }
  0x12   :  { %738 = shalt.err (!%p735_p7)
}
  0x13   :  { %s860_s19 = smov 64   ;;  %s861_s20 = smov 4  }
  0x14   :  { %43 = dma.hbm_to_vmem [thread:$0]  %s1040_s2, 1536, %s38_s10, [#allocation6], %s860_s19, %s860_s19, %s861_s20  }
  0x15   :  { %s862_s23 = smov [#allocation2]   ;;  %s863_s25 = smov [#allocation7]  }
  0x16   :  { %s26_s24 = sshll.u32 %s862_s23, 4  ;;  %s51_s26 = sshll.u32 %s863_s25, 4  ;;  %s27_s24 = int_to_ptr.vmem [resolvable:$true] %s26_s24  ;;  %s52_s26 = int_to_ptr.vmem [resolvable:$true] %s51_s26 }
  0x17   :  { %s739_s29 = scalar_lea.hbm %s1038_s0, 128 }
  0x18   :  { %p740_p8 = scmp.ne.s32.totalorder %s1038_s0, %s739_s29  ;;  %p743_p9 = scmp.lt.u32.totalorder %s739_s29, %s1038_s0 }
  0x1a   :  { %p745_p10 = pnand %p743_p9, %p740_p8 }
  0x1c   :  { %748 = shalt.err (!%p745_p10)
}
  0x1d   :  { %s749_s2 = scalar_lea.vmem %s27_s24, 128  ;;  %p754_p12 = scmp.lt.s32.totalorder %s27_s24, %s27_s24 }
  0x1e   :  { %p750_p11 = scmp.ne.s32.totalorder %s27_s24, %s749_s2  ;;  %p755_p13 = scmp.lt.s32.totalorder %s749_s2, %s749_s2 }
  0x20   :  { %p756_p0 = por %p755_p13, %p754_p12 }
  0x22   :  { %p757_p1 = pnand %p756_p0, %p750_p11 }
  0x24   :  { %760 = shalt.err (!%p757_p1)
}
  0x25   :  { %29 = dma.hbm_to_vmem [thread:$0]  %s1038_s0, 128, %s27_s24, [#allocation3]  }
  0x26   :  { %s761_s17 = scalar_lea.hbm %s1042_s4, 1024 }
  0x27   :  { %p762_p2 = scmp.ne.s32.totalorder %s1042_s4, %s761_s17  ;;  %p765_p3 = scmp.lt.u32.totalorder %s761_s17, %s1042_s4 }
  0x29   :  { %p767_p4 = pnand %p765_p3, %p762_p2 }
  0x2b   :  { %770 = shalt.err (!%p767_p4)
}
  0x2c   :  { %s771_s25 = scalar_lea.vmem %s52_s26, 1024  ;;  %p776_p6 = scmp.lt.s32.totalorder %s52_s26, %s52_s26 }
  0x2d   :  { %p772_p5 = scmp.ne.s32.totalorder %s52_s26, %s771_s25  ;;  %p777_p7 = scmp.lt.s32.totalorder %s771_s25, %s771_s25 }
  0x2f   :  { %p778_p8 = por %p777_p7, %p776_p6 }
  0x31   :  { %p779_p9 = pnand %p778_p8, %p772_p5 }
  0x33   :  { %782 = shalt.err (!%p779_p9)
}
  0x34   :  { %57 = dma.hbm_to_vmem [thread:$0]  %s1042_s4, 1024, %s52_s26, [#allocation6], %s860_s19, %s860_s19, %s861_s20  }
  0x35   :  { %s864_s27 = smov [#allocation8]   ;;  %s783_s11 = scalar_lea.hbm %s1044_s6, 1024 }
  0x36   :  { %s65_s28 = sshll.u32 %s864_s27, 4  ;;  %p784_p10 = scmp.ne.s32.totalorder %s1044_s6, %s783_s11  ;;  %s66_s28 = int_to_ptr.vmem [resolvable:$true] %s65_s28 }
  0x37   :  { %p787_p11 = scmp.lt.u32.totalorder %s783_s11, %s1044_s6 }
  0x39   :  { %p789_p12 = pnand %p787_p11, %p784_p10 }
  0x3b   :  { %792 = shalt.err (!%p789_p12)
}
  0x3c   :  { %s793_s14 = scalar_lea.vmem %s66_s28, 1024  ;;  %p798_p0 = scmp.lt.s32.totalorder %s66_s28, %s66_s28 }
  0x3d   :  { %p794_p13 = scmp.ne.s32.totalorder %s66_s28, %s793_s14  ;;  %p799_p1 = scmp.lt.s32.totalorder %s793_s14, %s793_s14 }
  0x3f   :  { %p800_p2 = por %p799_p1, %p798_p0 }
  0x41   :  { %p801_p3 = pnand %p800_p2, %p794_p13 }
  0x43   :  { %804 = shalt.err (!%p801_p3)
}
  0x44   :  { %71 = dma.hbm_to_vmem [thread:$0]  %s1044_s6, 1024, %s66_s28, [#allocation9], %s860_s19, %s860_s19, %s861_s20  }
  0x45   :  { %849 = dma.done.wait [#allocation3], 128  }
  0x46   :  { %850 = vsyncadd [#allocation3], 4294967168 }
  0x47   :  { %851 = dma.done.wait [#allocation6], 2560  }
  0x48   :  { %852 = vsyncadd [#allocation6], 4294964736 }
  0x49   :  { %853 = dma.done.wait [#allocation9], 1024  }
  0x4a   :  { %854 = vsyncadd [#allocation9], 4294966272  ;;  %v865_v0 = vmov 0   ;;  %v683_v1 = vld [vmem:[#allocation5] sm:$0xff]   ;;  %v684_v2 = vld [vmem:[#allocation5 + $0x8] sm:$0xff]   ;;  %vm197_vm0 = vcmask 523264  }
  0x4b   :  { %201 = vmatprep.subr.bf16.mxu0 %v865_v0  ;;  %v685_v3 = vld [vmem:[#allocation5 + $0x10] sm:$0xff]   ;;  %v686_v4 = vld [vmem:[#allocation5 + $0x18] sm:$0xff]   ;;  %v687_v5 = vld [vmem:[#allocation5 + $0x20] sm:$0xff]   ;;  %v866_v16 = vmov 0.0   ;;  %vm867_vm1 = vmmov 0   ;;  %vm247_vm2 = vcmask 1043456  }
  0x4c   :  { %202 = vmatpush1.bf16.msra.mxu0 %v683_v1  ;;  %v87_v6 = vld [vmem:[#allocation2] sm:$0xff]  ;;  %v688_v8 = vld [vmem:[#allocation5 + $0x28] sm:$0xff]   ;;  %v689_v9 = vld [vmem:[#allocation5 + $0x30] sm:$0xff]   ;;  %632 = vmatprep.subr.bf16.mxu1 %v866_v16  ;;  %vm243_vm3 = vcmask 64512   ;;  %vm518_vm4 = vcmask 1041408  }
  0x4d   :  { %203 = vmatprep.subr.bf16.mxu0 %v865_v0  ;;  %v573_v7 = vcombine.high %v87_v6, %v87_v6  ;;  %v690_v10 = vld [vmem:[#allocation5 + $0x38] sm:$0xff]   ;;  %v691_v11 = vld [vmem:[#allocation5 + $0x40] sm:$0xff]   ;;  %v692_v12 = vld [vmem:[#allocation5 + $0x48] sm:$0xff]   ;;  %v572_v15 = vcombine.low %v87_v6, %v87_v6  ;;  %648 = vmatprep.mubr.msk.bf16.mxu1 %vm867_vm1, %v866_v16 }
  0x4e   :  { %v693_v13 = vld [vmem:[#allocation5 + $0x50] sm:$0xff]   ;;  %v694_v14 = vld [vmem:[#allocation5 + $0x58] sm:$0xff]   ;;  %v697_v17 = vld [vmem:[#allocation7] sm:$0xff]  }
  0x4f   :  { %586 = vmatprep.mubr.msk.bf16.mxu0 %vm197_vm0, %v573_v7  ;;  %633 = vmatpush3.bf16.msra.mxu1 %v697_v17  ;;  %v698_v18 = vld [vmem:[#allocation7 + $0x8] sm:$0xff]   ;;  %v699_v19 = vld [vmem:[#allocation7 + $0x10] sm:$0xff]   ;;  %v700_v20 = vld [vmem:[#allocation7 + $0x18] sm:$0xff]  }
  0x50   :  { %204 = vmatpush1.bf16.msra.mxu0 %v684_v2  ;;  %634 = vmatprep.subr.bf16.mxu1 %v866_v16  ;;  %v701_v21 = vld [vmem:[#allocation7 + $0x20] sm:$0xff]   ;;  %v702_v22 = vld [vmem:[#allocation7 + $0x28] sm:$0xff]   ;;  %v703_v23 = vld [vmem:[#allocation7 + $0x30] sm:$0xff]  }
  0x51   :  { %205 = vmatprep.subr.bf16.mxu0 %v865_v0  ;;  %v571_v24 = vld [vmem:[%s1041_s3] ss:$0 sm:$0xff]  ;;  %v705_v35 = vld [vmem:[#allocation8] sm:$0xff]   ;;  %v706_v40 = vld [vmem:[#allocation8 + $0x8] sm:$0xff]  }
  0x52   :  { %v241_v32 = vld [vmem:[%s1039_s1] sm:$0x1]  ;;  %v707_v41 = vld [vmem:[#allocation8 + $0x10] sm:$0xff]   ;;  %v709_v43 = vld [vmem:[#allocation8 + $0x20] sm:$0xff]  }
  0x53   :  { %635 = vmatpush3.bf16.msra.mxu1 %v698_v18  ;;  %v704_v33 = vld [vmem:[#allocation7 + $0x38] sm:$0xff]   ;;  %v710_v44 = vld [vmem:[#allocation8 + $0x28] sm:$0xff]   ;;  %v711_v45 = vld [vmem:[#allocation8 + $0x30] sm:$0xff]  }
  0x54   :  { %206 = vmatpush1.bf16.msra.mxu0 %v685_v3  ;;  %636 = vmatprep.subr.bf16.mxu1 %v866_v16  ;;  %v708_v42 = vld [vmem:[#allocation8 + $0x18] sm:$0xff]  }
  0x55   :  { %207 = vmatprep.subr.bf16.mxu0 %v865_v0  ;;  %v712_v46 = vld [vmem:[#allocation8 + $0x38] sm:$0xff]  }
  0x56   :  { %v588_v47 = vld [vmem:[%s1043_s5] ss:$0 sm:$0xff]  ;;  %s868_s5 = smov [#allocation10]  }
  0x57   :  { %637 = vmatpush3.bf16.msra.mxu1 %v699_v19  ;;  %v597_v55 = vld [vmem:[%s1045_s7] ss:$0 sm:$0xff]  ;;  %s546_s18 = sshll.u32 %s868_s5, 4  ;;  %s547_s18 = int_to_ptr.vmem [resolvable:$true] %s546_s18 }
  0x58   :  { %208 = vmatpush1.bf16.msra.mxu0 %v686_v4  ;;  %638 = vmatprep.subr.bf16.mxu1 %v866_v16  ;;  %s805_s21 = scalar_lea.vmem %s547_s18, 32  ;;  %p810_p5 = scmp.lt.s32.totalorder %s547_s18, %s547_s18 }
  0x59   :  { %209 = vmatprep.subr.bf16.mxu0 %v865_v0  ;;  %p806_p4 = scmp.ne.s32.totalorder %s547_s18, %s805_s21  ;;  %p811_p6 = scmp.lt.s32.totalorder %s805_s21, %s805_s21 }
  0x5b   :  { %639 = vmatpush3.bf16.msra.mxu1 %v700_v20  ;;  %p812_p7 = por %p811_p6, %p810_p5 }
  0x5c   :  { %210 = vmatpush1.bf16.msra.mxu0 %v687_v5  ;;  %640 = vmatprep.subr.bf16.mxu1 %v866_v16 }
  0x5d   :  { %211 = vmatprep.subr.bf16.mxu0 %v865_v0  ;;  %p813_p8 = pnand %p812_p7, %p806_p4 }
  0x5f   :  { %641 = vmatpush3.bf16.msra.mxu1 %v701_v21 }
  0x60   :  { %212 = vmatpush1.bf16.msra.mxu0 %v688_v8  ;;  %642 = vmatprep.subr.bf16.mxu1 %v866_v16 }
  0x61   :  { %213 = vmatprep.subr.bf16.mxu0 %v865_v0 }
  0x63   :  { %643 = vmatpush3.bf16.msra.mxu1 %v702_v22 }
  0x64   :  { %214 = vmatpush1.bf16.msra.mxu0 %v689_v9  ;;  %644 = vmatprep.subr.bf16.mxu1 %v866_v16 }
  0x65   :  { %215 = vmatprep.subr.bf16.mxu0 %v865_v0 }
  0x67   :  { %645 = vmatpush3.bf16.msra.mxu1 %v703_v23 }
  0x68   :  { %216 = vmatpush1.bf16.msra.mxu0 %v690_v10  ;;  %646 = vmatprep.subr.bf16.mxu1 %v866_v16 }
  0x69   :  { %217 = vmatprep.subr.bf16.mxu0 %v865_v0 }
  0x6b   :  { %647 = vmatpush3.bf16.msra.mxu1 %v704_v33 }
  0x6c   :  { %218 = vmatpush1.bf16.msra.mxu0 %v691_v11  ;;  %652 = vmatprep.subr.bf16.mxu1 %v866_v16 }
  0x6d   :  { %219 = vmatprep.subr.bf16.mxu0 %v865_v0 }
  0x70   :  { %220 = vmatpush1.bf16.msra.mxu0 %v692_v12 }
  0x71   :  { %221 = vmatprep.subr.bf16.mxu0 %v865_v0 }
  0x74   :  { %222 = vmatpush1.bf16.msra.mxu0 %v693_v13 }
  0x75   :  { %223 = vmatprep.subr.bf16.mxu0 %v865_v0 }
  0x78   :  { %224 = vmatpush1.bf16.msra.mxu0 %v694_v14 }
  0x79   :  { %626 = vmatprep.subr.bf16.mxu0 %v866_v16 }
  0x7b   :  { %234 = vmatmul.mubr.bf16.vlgmr.msra.gmra.mrb[0].mxu0 %v572_v15 }
  0x7c   :  { %628 = vmatprep.mubr.msk.bf16.mxu0 %vm867_vm1, %v866_v16 }
 0x14e   :  { %v235_v25 = vpop.f32.mrb[0].mxu0 }
 0x14f   :  { %v236_v26 = vadd.f32 %v571_v24, %v235_v25  ;;  %v237_v27 = vpop.f32.mrb[1].mxu0 }
 0x150   :  { %v238_v28 = vpop.f32.mrb[2].mxu0 }
 0x151   :  { %v242_v29 = vpack.c.bf16 %v236_v26, %v236_v26  ;;  %v239_v30 = vpop.f32.mrb[3].mxu0 }
 0x153   :  { %v249_v31 = vsel %vm247_vm2, %v242_v29, 0 }
 0x154   :  { %627 = vmatpush3.bf16.msra.mxu0 %v249_v31 }
 0x157   :  { %629 = vmatmul.mubr.msk.bf16.vlgmr.msra.gmra.mrb[4].mxu0 %vm243_vm3, %v241_v32 }
 0x22a   :  { %v285_v34 = vpop.f32.mrb[4].mxu0 }
 0x22b   :  { %v291_v36 = vpack.c.bf16 %v285_v34, %v285_v34  ;;  %v630_v37 = vpop.f32.mrb[5].mxu0 }
 0x22c   :  { %v288_v38 = vpop.f32.mrb[6].mxu0 }
 0x22d   :  { %649 = vmatmul.mubr.bf16.vlgmr.msra.gmra.mrb[0].mxu1 %v291_v36  ;;  %v631_v39 = vpop.f32.mrb[7].mxu0 }
 0x22e   :  { %653 = vmatpush3.bf16.msra.mxu1 %v705_v35  ;;  %668 = vmatprep.mubr.msk.bf16.mxu1 %vm867_vm1, %v866_v16 }
 0x22f   :  { %654 = vmatprep.subr.bf16.mxu1 %v866_v16 }
 0x232   :  { %655 = vmatpush3.bf16.msra.mxu1 %v706_v40 }
 0x233   :  { %656 = vmatprep.subr.bf16.mxu1 %v866_v16 }
 0x236   :  { %657 = vmatpush3.bf16.msra.mxu1 %v707_v41 }
 0x237   :  { %658 = vmatprep.subr.bf16.mxu1 %v866_v16 }
 0x23a   :  { %659 = vmatpush3.bf16.msra.mxu1 %v708_v42 }
 0x23b   :  { %660 = vmatprep.subr.bf16.mxu1 %v866_v16 }
 0x23e   :  { %661 = vmatpush3.bf16.msra.mxu1 %v709_v43 }
 0x23f   :  { %662 = vmatprep.subr.bf16.mxu1 %v866_v16 }
 0x242   :  { %663 = vmatpush3.bf16.msra.mxu1 %v710_v44 }
 0x243   :  { %664 = vmatprep.subr.bf16.mxu1 %v866_v16 }
 0x246   :  { %665 = vmatpush3.bf16.msra.mxu1 %v711_v45 }
 0x247   :  { %666 = vmatprep.subr.bf16.mxu1 %v866_v16 }
 0x24a   :  { %667 = vmatpush3.bf16.msra.mxu1 %v712_v46 }
 0x300   :  { %v397_v48 = vpop.f32.mrb[0].mxu1 }
 0x301   :  { %v398_v49 = vadd.f32 %v588_v47, %v397_v48  ;;  %v650_v50 = vpop.f32.mrb[1].mxu1 }
 0x302   :  { %v400_v51 = vpop.f32.mrb[2].mxu1 }
 0x303   :  { %713 = vtanh.f32 %v398_v49  ;;  %v651_v52 = vpop.f32.mrb[3].mxu1 }
 0x30d   :  { %v714_v53 = vpop.eup %713 }
 0x30e   :  { %v404_v54 = vpack.c.bf16 %v714_v53, %v714_v53 }
 0x310   :  { %669 = vmatmul.mubr.bf16.vlgmr.msra.gmra.mrb[4].mxu1 %v404_v54 }
 0x3e3   :  { %v510_v56 = vpop.f32.mrb[4].mxu1 }
 0x3e4   :  { %v511_v57 = vadd.f32 %v597_v55, %v510_v56  ;;  %v670_v58 = vpop.f32.mrb[5].mxu1 }
 0x3e5   :  { %v513_v59 = vpop.f32.mrb[6].mxu1 }
 0x3e6   :  { %516 = vst [vmem:[#allocation10] sm:$0x3] %v511_v57  ;;  %v671_v60 = vpop.f32.mrb[7].mxu1  ;;  %v517_v61 = vmul.f32 %v511_v57, %v511_v57 }
 0x3e8   :  { %v519_v62 = vsel %vm518_vm4, %v517_v61, 0.0 }
 0x3e9   :  { %520 = vadd.xlane.f32.xlu0 %v519_v62 }
 0x3ea   :  { %816 = shalt.err (!%p813_p8)
}
 0x3eb   :  { %s817_s23 = scalar_lea.hbm %s1046_s8, 32 }
 0x3ec   :  { %p818_p9 = scmp.ne.s32.totalorder %s1046_s8, %s817_s23  ;;  %p821_p10 = scmp.lt.u32.totalorder %s817_s23, %s1046_s8 }
 0x3ee   :  { %p823_p11 = pnand %p821_p10, %p818_p9 }
 0x3f0   :  { %826 = shalt.err (!%p823_p11)
}
 0x3f1   :  { %549 = dma.vmem_to_hbm [thread:$0]  %s547_s18, 32, %s1046_s8, [#allocation4]   ;;  %vm538_vm7 = vcmask 0  }
 0x3f2   :  { %s869_s30 = smov [#allocation11]  }
 0x3f3   :  { %s556_s11 = sshll.u32 %s869_s30, 4  ;;  %s557_s11 = int_to_ptr.vmem [resolvable:$true] %s556_s11 }
 0x3f4   :  { %s827_s8 = scalar_lea.vmem %s557_s11, 16  ;;  %s831_s12 = scalar_lea.vmem %s557_s11, 32 }
 0x3f5   :  { %p828_p12 = scmp.ne.s32.totalorder %s557_s11, %s827_s8  ;;  %p832_p13 = scmp.lt.s32.totalorder %s557_s11, %s557_s11 }
 0x3f6   :  { %p833_p0 = scmp.lt.s32.totalorder %s831_s12, %s827_s8 }
 0x3f8   :  { %p834_p1 = por %p833_p0, %p832_p13 }
 0x3fa   :  { %p835_p2 = pnand %p834_p1, %p828_p12 }
 0x476   :  { %v521_v63 = vpop.xlane.xlu0 %520 }
 0x477   :  { %715 = vrsqrt.f32 %v521_v63  ;;  %vm524_vm5 = vcmp.eq.f32.partialorder %v521_v63, inf  ;;  %v527_v2 = vand.u32 2147483648, %v521_v63  ;;  %vm526_vm6 = vcmp.eq.f32.partialorder %v521_v63, 0.0 }
 0x481   :  { %v716_v0 = vpop.eup %715 }
 0x482   :  { %v523_v1 = vmul.f32 %v716_v0, %v521_v63 }
 0x484   :  { %v525_v3 = vsel %vm524_vm5, %v521_v63, %v523_v1 }
 0x485   :  { %v528_v4 = vsel %vm526_vm6, %v527_v2, %v525_v3 }
 0x486   :  { %v529_v5 = vsel %vm518_vm4, %v528_v4, 0.0 }
 0x487   :  { %v530_v6 = vrot.slane %v529_v5, 4 }
 0x489   :  { %v531_v7 = vadd.f32 %v530_v6, %v529_v5 }
 0x48b   :  { %v532_v8 = vrot.slane %v531_v7, 2 }
 0x48d   :  { %v533_v9 = vadd.f32 %v532_v8, %v531_v7 }
 0x48f   :  { %v534_v10 = vrot.slane %v533_v9, 1 }
 0x491   :  { %v535_v11 = vadd.f32 %v534_v10, %v533_v9 }
 0x493   :  { %v537_v12 = vmul.f32 0.5, %v535_v11 }
 0x495   :  { %539 = vst.msk [vmem:[#allocation11] sm:$0x1] %vm538_vm7, %v537_v12 }
 0x496   :  { %838 = shalt.err (!%p835_p2)
}
 0x497   :  { %s839_s10 = scalar_lea.hbm %s1047_s9, 16 }
 0x498   :  { %p840_p3 = scmp.ne.s32.totalorder %s1047_s9, %s839_s10  ;;  %p843_p4 = scmp.lt.u32.totalorder %s839_s10, %s1047_s9 }
 0x49a   :  { %p845_p5 = pnand %p843_p4, %p840_p3 }
 0x49c   :  { %848 = shalt.err (!%p845_p5)
}
 0x49d   :  { %559 = dma.vmem_to_hbm [thread:$0]  %s557_s11, 16, %s1047_s9, [#allocation12]  }
 0x49e   :  { %855 = dma.done.wait [#allocation4], 32  }
 0x49f   :  { %856 = vsyncadd [#allocation4], 4294967264 }
 0x4a0   :  { %857 = dma.done.wait [#allocation12], 16  }
 0x4a1   :  { %858 = vsyncadd [#allocation12], 4294967280 }
 0x4a2   :  { %566 = vsyncpa [#allocation3], 1 }
 0x4a3   :  { %567 = vsyncpa [#allocation6], 1 }
 0x4a4   :  { %568 = vsyncpa [#allocation9], 1 }
 0x4a5   :  { %569 = vsyncpa [#allocation4], 1 }
 0x4a6   :  { %570 = vsyncpa [#allocation12], 1 }

</bundles_post_ra>
